<compile_context>
chip_gen: v6e
topology: v6e:2x2x1
jax: 0.10.0
libtpu: 0.0.40
codegen_flags: <defaults>
</compile_context>

<pallas_src>
import numpy as np
import jax
import jax.numpy as jnp
from jax.experimental import pallas as pl
from jax.experimental.pallas import tpu as pltpu


def _round_up(x, m):
    return ((x + m - 1) // m) * m


# ----------------------------------------------------------------------------
# Init-time glue (mirrors ourModel_basis.__init__ / produce_cross_basis)
# ----------------------------------------------------------------------------
def basis_process_dim32_class2(basis_dim, basis_num, h, num_class=2):
    # TODO(synk): source of basis_process_dim32_class2 is not provided; we
    # synthesize deterministic, invertible near-identity basis matrices with
    # the shape the rest of the code requires: (num_class, basis_num, d, d).
    rng = np.random.default_rng(0)
    d, N, c = basis_dim, basis_num, num_class
    pert = rng.standard_normal((c, N, d, d))
    return np.eye(d)[None, None, :, :] + h * pert


def produce_cross_basis(basis_matrix, num_class, basis_num, basis_dim):
    """Exact numpy port of ourModel_basis.produce_cross_basis (init-time)."""
    bm = np.asarray(basis_matrix, dtype=np.float64)
    inv_bm = np.linalg.inv(bm)
    bm = bm / np.max(np.linalg.eigvals(bm).real)
    inv_bm = inv_bm / np.max(np.linalg.eigvals(inv_bm).real)
    c, N, d = num_class, basis_num, basis_dim

    combine = np.empty((c, c, N, d, d))
    for i in range(c):
        for j in range(c):
            if i == j:
                combine[i][j] = np.broadcast_to(np.eye(d), (N, d, d))
            else:
                combine[i][j] = np.einsum('bij,bjk->bik', bm[i], inv_bm[j])

    cross = np.empty((c, c, 2 ** (N // 2), d, d))
    for i in range(c):
        for j in range(c):
            if i == j:
                cross[i][j] = np.broadcast_to(np.eye(d), (2 ** (N // 2), d, d))
            else:
                for idx in range(2 ** (N // 2)):
                    seq = [(idx >> k) & 1 for k in range(N // 2)]
                    cm = combine[i][j]
                    if i < j:
                        sel = [cm[2 * k + bit] for k, bit in enumerate(seq)]
                    else:
                        seq = list(reversed(seq))
                        sel = [cm[2 * (N // 2 - k) - bit - 1]
                               for k, bit in enumerate(seq)]
                    res = sel[0]
                    for m in sel[1:]:
                        res = res @ m
                    cross[i][j][idx] = res
    return cross.astype(np.float32)


# ----------------------------------------------------------------------------
# Pallas kernels
# ----------------------------------------------------------------------------
def fused_model_kernel(x_ref, a_ref, w_ref, b_ref, shift_ref,
                       wo_ref, bo_ref, o_ref):
    """Whole forward in one launch (small graphs).

    Per layer (basis + BN already folded into W''/b''/t at init):
        h = relu(A @ (h @ W''_l + b''_l) + t_l)
    Final: logits = h @ W_out + b_out.
    MXU dots take bf16 operands with f32 accumulation; epilogue stays f32.
    A and the activations stay resident in VMEM for the entire forward.
    """
    num_layers = w_ref.shape[0]
    a = a_ref[...]                          # (N, N)  bf16
    h = x_ref[...]                          # (N, D)  f32
    for l in range(num_layers):             # static unroll over layers
        y = jnp.dot(h.astype(jnp.bfloat16), w_ref[l],
                    preferred_element_type=jnp.float32) + b_ref[l]
        agg = jnp.dot(a, y.astype(jnp.bfloat16),
                      preferred_element_type=jnp.float32)
        h = jnp.maximum(agg + shift_ref[l], 0.0)
    o_ref[...] = jnp.dot(h.astype(jnp.bfloat16), wo_ref[...],
                         preferred_element_type=jnp.float32) + bo_ref[...]


def xw_kernel(x_ref, w_ref, b_ref, o_ref):
    """Lane-dense Y = x @ W + b (row-tiled).  Used once, for the first layer."""
    y = jnp.dot(x_ref[...].astype(jnp.bfloat16), w_ref[...],
                preferred_element_type=jnp.float32) + b_ref[...]
    o_ref[...] = y.astype(o_ref.dtype)


def agg_relu_xw_kernel(a_ref, y_ref, shift_ref, wn_ref, bn_ref, o_ref, acc_ref):
    """Tiled  out = relu(A @ Y + t) @ W_next + b_next  (f32 K-axis accumulator).

    The finalize applies the *next* layer's (or the final linear's) x@W + b so
    intermediate activations never make an extra HBM round trip.
    """
    @pl.when(pl.program_id(1) == 0)
    def _init():
        acc_ref[...] = jnp.zeros_like(acc_ref)

    acc_ref[...] += jnp.dot(a_ref[...], y_ref[...],
                            preferred_element_type=jnp.float32)

    @pl.when(pl.program_id(1) == pl.num_programs(1) - 1)
    def _finalize():
        h = jnp.maximum(acc_ref[...] + shift_ref[...], 0.0)
        o_ref[...] = (jnp.dot(h.astype(jnp.bfloat16), wn_ref[...],
                              preferred_element_type=jnp.float32)
                      + bn_ref[...]).astype(o_ref.dtype)


# ----------------------------------------------------------------------------
# Kernel wrappers
# ----------------------------------------------------------------------------
_VMEM = pl.BlockSpec(memory_space=pltpu.MemorySpace.VMEM)


def _pick_row_tile(n, preferred=512):
    if n <= preferred:
        return n
    t = preferred
    while t >= 8:
        if n % t == 0 and t % 8 == 0:
            return t
        t -= 8
    return n


def _pick_k_tile(n, preferred=512):
    if n <= preferred:
        return n
    t = preferred
    while t >= 128:
        if n % t == 0 and t % 128 == 0:
            return t
        t -= 128
    return n


def fused_forward_call(x_pad, a_bf16, w_stack, b_stack, shift_stack,
                       w_out, b_out, o_pad):
    n = x_pad.shape[0]
    return pl.pallas_call(
        fused_model_kernel,
        out_shape=jax.ShapeDtypeStruct((n, o_pad), jnp.float32),
        in_specs=[_VMEM] * 7,
        out_specs=_VMEM,
        compiler_params=pltpu.CompilerParams(
            vmem_limit_bytes=48 * 1024 * 1024),
    )(x_pad, a_bf16, w_stack, b_stack, shift_stack, w_out, b_out)


def xw_bias(x_pad, w, b, out_dtype, tm=None):
    n, f = x_pad.shape
    d = w.shape[1]
    tm = tm if tm is not None else _pick_row_tile(n)
    return pl.pallas_call(
        xw_kernel,
        out_shape=jax.ShapeDtypeStruct((n, d), out_dtype),
        grid_spec=pltpu.PrefetchScalarGridSpec(
            num_scalar_prefetch=0,
            grid=(n // tm,),
            in_specs=[pl.BlockSpec((tm, f), lambda i: (i, 0)),
                      pl.BlockSpec((f, d), lambda i: (0, 0)),
                      pl.BlockSpec((1, d), lambda i: (0, 0))],
            out_specs=pl.BlockSpec((tm, d), lambda i: (i, 0))),
        compiler_params=pltpu.CompilerParams(
            dimension_semantics=("parallel",)),
    )(x_pad, w, b)


def agg_relu_xw(a_bf16, y_bf16, shift, w_next, b_next, out_dtype,
                tm=None, tk=None):
    """out = relu(A @ Y + shift) @ W_next + b_next, tiled over (rows, K)."""
    n = a_bf16.shape[0]
    d = y_bf16.shape[1]
    dn = w_next.shape[1]
    tm = tm if tm is not None else _pick_row_tile(n)
    tk = tk if tk is not None else _pick_k_tile(n)
    return pl.pallas_call(
        agg_relu_xw_kernel,
        out_shape=jax.ShapeDtypeStruct((n, dn), out_dtype),
        grid_spec=pltpu.PrefetchScalarGridSpec(
            num_scalar_prefetch=0,
            grid=(n // tm, n // tk),
            in_specs=[pl.BlockSpec((tm, tk), lambda i, k: (i, k)),
                      pl.BlockSpec((tk, d), lambda i, k: (k, 0)),
                      pl.BlockSpec((1, d), lambda i, k: (0, 0)),
                      pl.BlockSpec((d, dn), lambda i, k: (0, 0)),
                      pl.BlockSpec((1, dn), lambda i, k: (0, 0))],
            out_specs=pl.BlockSpec((tm, dn), lambda i, k: (i, 0)),
            scratch_shapes=[pltpu.VMEM((tm, d), jnp.float32)]),
        compiler_params=pltpu.CompilerParams(
            dimension_semantics=("parallel", "arbitrary")),
    )(a_bf16, y_bf16, shift, w_next, b_next)


# ----------------------------------------------------------------------------
# Model
# ----------------------------------------------------------------------------
class OurModelBasisPallas:
    def __init__(self, input_dim, hidden_dim, output_dim, num_layers, dropout,
                 basis_num=4, soft_flag=True, h=0.075, seed=0):
        self.num_layers = num_layers
        self.dropout = dropout            # eval mode: dropout is a no-op
        self.soft_flag = soft_flag
        self.input_dim = input_dim
        self.hidden_dim = hidden_dim
        self.output_dim = output_dim
        d = hidden_dim
        self.d_pad = _round_up(max(hidden_dim, input_dim), 128)
        self.o_pad = _round_up(output_dim, 128)

        basis = basis_process_dim32_class2(hidden_dim, basis_num, h,
                                           num_class=output_dim)
        cross = produce_cross_basis(basis, output_dim, basis_num, hidden_dim)
        nb = cross.shape[2]

        key = jax.random.PRNGKey(seed)
        Ws, bs, alphas = [], [], []
        dims = [input_dim] + [hidden_dim] * num_layers
        for l in range(num_layers):
            key, k1, k2, k3 = jax.random.split(key, 4)
            fan_in = dims[l]
            Ws.append(np.asarray(jax.random.normal(
                k1, (fan_in, hidden_dim), jnp.float32)) / np.sqrt(fan_in))
            bs.append(np.zeros((1, hidden_dim), np.float32))
            alphas.append(np.asarray(
                0.1 * jax.random.normal(k3, (nb,), jnp.float32)))
        key, ko = jax.random.split(key)
        W_out = np.asarray(jax.random.normal(
            ko, (hidden_dim, output_dim), jnp.float32)) / np.sqrt(hidden_dim)
        b_out = np.zeros((1, output_dim), np.float32)

        # BatchNorm1d defaults (eval mode running stats): w=1, b=0, mean=0, var=1
        gamma = np.ones((hidden_dim,), np.float32)
        beta = np.zeros((hidden_dim,), np.float32)
        mean = np.zeros((hidden_dim,), np.float32)
        var = np.ones((hidden_dim,), np.float32)
        eps = 1e-5
        s = gamma / np.sqrt(var + eps)      # BN scale (per column)
        t = beta - mean * s                 # BN shift (per column)

        # ---- fold basis mixture + BatchNorm into the layer weights --------
        #   relu( BN( (A @ (x W + b)) @ M ) ) == relu( A @ (x(W M s)+(b M s)) + t )
        L, dp, op = num_layers, self.d_pad, self.o_pad
        w_stack = np.zeros((L, dp, dp), np.float32)
        b_stack = np.zeros((L, 1, dp), np.float32)
        shift_stack = np.zeros((L, 1, dp), np.float32)
        for l in range(L):
            # TODO(synk): myConv_basis source is unavailable; its "soft" basis
            # selection is realized as a softmax-weighted mixture of the
            # cross-class basis matrices (class pair 0 -> 1).
            mix = np.asarray(jax.nn.softmax(jnp.asarray(alphas[l])))
            M = np.einsum('k,kij->ij', mix, cross[0, 1])          # (d, d)
            Wf = (Ws[l] @ M) * s[None, :]                         # (fan_in, d)
            bf = (bs[l] @ M) * s[None, :]                         # (1, d)
            fan_in = Ws[l].shape[0]
            w_stack[l, :fan_in, :d] = Wf
            b_stack[l, 0, :d] = bf[0]
            shift_stack[l, 0, :d] = t

        w_out_pad = np.zeros((dp, op), np.float32)
        w_out_pad[:hidden_dim, :output_dim] = W_out
        b_out_pad = np.zeros((1, op), np.float32)
        b_out_pad[0, :output_dim] = b_out[0]

        # bf16 operands for the MXU, f32 for bias / shift epilogue
        self.w_stack = jnp.asarray(w_stack, jnp.bfloat16)
        self.b_stack = jnp.asarray(b_stack, jnp.float32)
        self.shift_stack = jnp.asarray(shift_stack, jnp.float32)
        self.w_out = jnp.asarray(w_out_pad, jnp.bfloat16)
        self.b_out = jnp.asarray(b_out_pad, jnp.float32)

    # --------------------------------------------------------------------
    def _pad_inputs(self, x, a_norm):
        n = x.shape[0]
        x_pad = jnp.zeros((n, self.d_pad), jnp.float32)
        x_pad = x_pad.at[:, :x.shape[1]].set(x.astype(jnp.float32))
        return x_pad, a_norm.astype(jnp.bfloat16)

    def forward_fused(self, x, a_norm):
        x_pad, a_bf16 = self._pad_inputs(x, a_norm)
        out = fused_forward_call(x_pad, a_bf16, self.w_stack, self.b_stack,
                                 self.shift_stack, self.w_out, self.b_out,
                                 self.o_pad)
        return out[:, :self.output_dim]

    def forward_tiled(self, x, a_norm, tm=None, tk=None):
        """Large-graph path: one pallas_call per layer.

        y_0 = x @ W_0 + b_0
        y_{l+1} = relu(A @ y_l + t_l) @ W_{l+1} + b_{l+1}   (intermediate, bf16)
        logits  = relu(A @ y_{L-1} + t_{L-1}) @ W_out + b_out
        """
        x_pad, a_bf16 = self._pad_inputs(x, a_norm)
        y = xw_bias(x_pad, self.w_stack[0], self.b_stack[0],
                    jnp.bfloat16, tm=tm)
        for l in range(self.num_layers):
            if l < self.num_layers - 1:
                y = agg_relu_xw(a_bf16, y, self.shift_stack[l],
                                self.w_stack[l + 1], self.b_stack[l + 1],
                                jnp.bfloat16, tm=tm, tk=tk)
            else:
                logits = agg_relu_xw(a_bf16, y, self.shift_stack[l],
                                     self.w_out, self.b_out,
                                     jnp.float32, tm=tm, tk=tk)
        return logits[:, :self.output_dim]

    def forward(self, x, a_norm):
        # produce_message_passing_function(): pure setup, no forward effect.
        n = x.shape[0]
        fused_bytes = (n * n * 2 + 6 * n * self.d_pad * 4
                       + int(self.w_stack.size) * 2 + int(self.w_out.size) * 2
                       + n * self.o_pad * 4)
        if fused_bytes < 28 * 1024 * 1024:
            return self.forward_fused(x, a_norm)     # one launch, A read once
        return self.forward_tiled(x, a_norm)          # pipelined tiled path


def build_norm_adjacency(num_nodes, key):
    """Symmetric normalized adjacency D^-1/2 (A + I) D^-1/2, dense."""
    a = (jax.random.uniform(key, (num_nodes, num_nodes)) < 0.2).astype(jnp.float32)
    a = jnp.maximum(a, a.T)
    a = a + jnp.eye(num_nodes, dtype=jnp.float32)
    a = jnp.minimum(a, 1.0)
    deg = jnp.sum(a, axis=1)
    d_inv_sqrt = 1.0 / jnp.sqrt(deg)
    return a * d_inv_sqrt[:, None] * d_inv_sqrt[None, :]


if __name__ == "__main__":
    input_dim, hidden_dim, output_dim = 8, 32, 2
    num_layers, dropout, basis_num = 3, 0.5, 4
    num_nodes = 16

    key = jax.random.PRNGKey(0)
    kx, ka = jax.random.split(key)
    x = jax.random.normal(kx, (num_nodes, input_dim), jnp.float32)
    a_norm = build_norm_adjacency(num_nodes, ka)

    model = OurModelBasisPallas(input_dim, hidden_dim, output_dim,
                                num_layers, dropout, basis_num=basis_num,
                                soft_flag=True, h=0.075, seed=0)

    logits = jax.block_until_ready(model.forward(x, a_norm))
    assert logits.shape == (num_nodes, output_dim)
    assert bool(jnp.all(jnp.isfinite(logits)))

    # Also exercise the tiled (large-graph) path and cross-check vs fused.
    logits_tiled = jax.block_until_ready(model.forward_tiled(x, a_norm, tm=8))
    assert logits_tiled.shape == (num_nodes, output_dim)
    np.testing.assert_allclose(np.asarray(logits), np.asarray(logits_tiled),
                               rtol=2e-2, atol=2e-2)

    print("KERNEL_OK")
</pallas_src>

<mosaic_0001>
module attributes {stable_mosaic.version = 11 : i64} {
  func.func @fused_model_kernel(%arg0: memref<16x128xf32, #tpu.memory_space<vmem>>, %arg1: memref<16x16xbf16, #tpu.memory_space<vmem>>, %arg2: memref<3x128x128xbf16, #tpu.memory_space<vmem>>, %arg3: memref<3x1x128xf32, #tpu.memory_space<vmem>>, %arg4: memref<3x1x128xf32, #tpu.memory_space<vmem>>, %arg5: memref<128x128xbf16, #tpu.memory_space<vmem>>, %arg6: memref<1x128xf32, #tpu.memory_space<vmem>>, %arg7: memref<16x128xf32, #tpu.memory_space<vmem>>) attributes {dimension_semantics = [], scalar_prefetch = 0 : i64, scratch_operands = 0 : i64, tpu.core_type = #tpu.core_type<tc>} {
    %c0 = arith.constant 0 : index
    %c0_0 = arith.constant 0 : index
    %0 = vector.load %arg1[%c0, %c0_0] : memref<16x16xbf16, #tpu.memory_space<vmem>>, vector<16x16xbf16>
    %c0_1 = arith.constant 0 : index
    %c0_2 = arith.constant 0 : index
    %1 = vector.load %arg0[%c0_1, %c0_2] : memref<16x128xf32, #tpu.memory_space<vmem>>, vector<16x128xf32>
    %2 = arith.truncf %1 : vector<16x128xf32> to vector<16x128xbf16>
    %c0_3 = arith.constant 0 : index
    %c0_4 = arith.constant 0 : index
    %c0_5 = arith.constant 0 : index
    %3 = vector.load %arg2[%c0_3, %c0_4, %c0_5] : memref<3x128x128xbf16, #tpu.memory_space<vmem>>, vector<1x128x128xbf16>
    %4 = vector.shape_cast %3 : vector<1x128x128xbf16> to vector<128x128xbf16>
    %cst = arith.constant dense<0.000000e+00> : vector<16x128xf32>
    %5 = tpu.matmul %2, %4, %cst {dimension_numbers = #tpu.dot_dimension_numbers<[1], [0], [0], [1], [0, 0, 1, 1], [], []>} : vector<16x128xbf16>, vector<128x128xbf16>, vector<16x128xf32> -> vector<16x128xf32>
    %c0_6 = arith.constant 0 : index
    %c0_7 = arith.constant 0 : index
    %c0_8 = arith.constant 0 : index
    %6 = vector.load %arg3[%c0_6, %c0_7, %c0_8] : memref<3x1x128xf32, #tpu.memory_space<vmem>>, vector<1x1x128xf32>
    %7 = vector.shape_cast %6 : vector<1x1x128xf32> to vector<1x128xf32>
    %8 = vector.broadcast %7 : vector<1x128xf32> to vector<16x128xf32>
    %9 = arith.addf %5, %8 : vector<16x128xf32>
    %10 = arith.truncf %9 : vector<16x128xf32> to vector<16x128xbf16>
    %cst_9 = arith.constant dense<0.000000e+00> : vector<16x128xf32>
    %11 = tpu.matmul %0, %10, %cst_9 {dimension_numbers = #tpu.dot_dimension_numbers<[1], [0], [0], [1], [0, 0, 1, 1], [], []>} : vector<16x16xbf16>, vector<16x128xbf16>, vector<16x128xf32> -> vector<16x128xf32>
    %c0_10 = arith.constant 0 : index
    %c0_11 = arith.constant 0 : index
    %c0_12 = arith.constant 0 : index
    %12 = vector.load %arg4[%c0_10, %c0_11, %c0_12] : memref<3x1x128xf32, #tpu.memory_space<vmem>>, vector<1x1x128xf32>
    %13 = vector.shape_cast %12 : vector<1x1x128xf32> to vector<1x128xf32>
    %14 = vector.broadcast %13 : vector<1x128xf32> to vector<16x128xf32>
    %15 = arith.addf %11, %14 : vector<16x128xf32>
    %cst_13 = arith.constant 0.000000e+00 : f32
    %16 = vector.broadcast %cst_13 : f32 to vector<16x128xf32>
    %17 = arith.maximumf %15, %16 : vector<16x128xf32>
    %18 = arith.truncf %17 : vector<16x128xf32> to vector<16x128xbf16>
    %c1 = arith.constant 1 : index
    %c0_14 = arith.constant 0 : index
    %c0_15 = arith.constant 0 : index
    %19 = vector.load %arg2[%c1, %c0_14, %c0_15] : memref<3x128x128xbf16, #tpu.memory_space<vmem>>, vector<1x128x128xbf16>
    %20 = vector.shape_cast %19 : vector<1x128x128xbf16> to vector<128x128xbf16>
    %cst_16 = arith.constant dense<0.000000e+00> : vector<16x128xf32>
    %21 = tpu.matmul %18, %20, %cst_16 {dimension_numbers = #tpu.dot_dimension_numbers<[1], [0], [0], [1], [0, 0, 1, 1], [], []>} : vector<16x128xbf16>, vector<128x128xbf16>, vector<16x128xf32> -> vector<16x128xf32>
    %c1_17 = arith.constant 1 : index
    %c0_18 = arith.constant 0 : index
    %c0_19 = arith.constant 0 : index
    %22 = vector.load %arg3[%c1_17, %c0_18, %c0_19] : memref<3x1x128xf32, #tpu.memory_space<vmem>>, vector<1x1x128xf32>
    %23 = vector.shape_cast %22 : vector<1x1x128xf32> to vector<1x128xf32>
    %24 = vector.broadcast %23 : vector<1x128xf32> to vector<16x128xf32>
    %25 = arith.addf %21, %24 : vector<16x128xf32>
    %26 = arith.truncf %25 : vector<16x128xf32> to vector<16x128xbf16>
    %cst_20 = arith.constant dense<0.000000e+00> : vector<16x128xf32>
    %27 = tpu.matmul %0, %26, %cst_20 {dimension_numbers = #tpu.dot_dimension_numbers<[1], [0], [0], [1], [0, 0, 1, 1], [], []>} : vector<16x16xbf16>, vector<16x128xbf16>, vector<16x128xf32> -> vector<16x128xf32>
    %c1_21 = arith.constant 1 : index
    %c0_22 = arith.constant 0 : index
    %c0_23 = arith.constant 0 : index
    %28 = vector.load %arg4[%c1_21, %c0_22, %c0_23] : memref<3x1x128xf32, #tpu.memory_space<vmem>>, vector<1x1x128xf32>
    %29 = vector.shape_cast %28 : vector<1x1x128xf32> to vector<1x128xf32>
    %30 = vector.broadcast %29 : vector<1x128xf32> to vector<16x128xf32>
    %31 = arith.addf %27, %30 : vector<16x128xf32>
    %cst_24 = arith.constant 0.000000e+00 : f32
    %32 = vector.broadcast %cst_24 : f32 to vector<16x128xf32>
    %33 = arith.maximumf %31, %32 : vector<16x128xf32>
    %34 = arith.truncf %33 : vector<16x128xf32> to vector<16x128xbf16>
    %c2 = arith.constant 2 : index
    %c0_25 = arith.constant 0 : index
    %c0_26 = arith.constant 0 : index
    %35 = vector.load %arg2[%c2, %c0_25, %c0_26] : memref<3x128x128xbf16, #tpu.memory_space<vmem>>, vector<1x128x128xbf16>
    %36 = vector.shape_cast %35 : vector<1x128x128xbf16> to vector<128x128xbf16>
    %cst_27 = arith.constant dense<0.000000e+00> : vector<16x128xf32>
    %37 = tpu.matmul %34, %36, %cst_27 {dimension_numbers = #tpu.dot_dimension_numbers<[1], [0], [0], [1], [0, 0, 1, 1], [], []>} : vector<16x128xbf16>, vector<128x128xbf16>, vector<16x128xf32> -> vector<16x128xf32>
    %c2_28 = arith.constant 2 : index
    %c0_29 = arith.constant 0 : index
    %c0_30 = arith.constant 0 : index
    %38 = vector.load %arg3[%c2_28, %c0_29, %c0_30] : memref<3x1x128xf32, #tpu.memory_space<vmem>>, vector<1x1x128xf32>
    %39 = vector.shape_cast %38 : vector<1x1x128xf32> to vector<1x128xf32>
    %40 = vector.broadcast %39 : vector<1x128xf32> to vector<16x128xf32>
    %41 = arith.addf %37, %40 : vector<16x128xf32>
    %42 = arith.truncf %41 : vector<16x128xf32> to vector<16x128xbf16>
    %cst_31 = arith.constant dense<0.000000e+00> : vector<16x128xf32>
    %43 = tpu.matmul %0, %42, %cst_31 {dimension_numbers = #tpu.dot_dimension_numbers<[1], [0], [0], [1], [0, 0, 1, 1], [], []>} : vector<16x16xbf16>, vector<16x128xbf16>, vector<16x128xf32> -> vector<16x128xf32>
    %c2_32 = arith.constant 2 : index
    %c0_33 = arith.constant 0 : index
    %c0_34 = arith.constant 0 : index
    %44 = vector.load %arg4[%c2_32, %c0_33, %c0_34] : memref<3x1x128xf32, #tpu.memory_space<vmem>>, vector<1x1x128xf32>
    %45 = vector.shape_cast %44 : vector<1x1x128xf32> to vector<1x128xf32>
    %46 = vector.broadcast %45 : vector<1x128xf32> to vector<16x128xf32>
    %47 = arith.addf %43, %46 : vector<16x128xf32>
    %cst_35 = arith.constant 0.000000e+00 : f32
    %48 = vector.broadcast %cst_35 : f32 to vector<16x128xf32>
    %49 = arith.maximumf %47, %48 : vector<16x128xf32>
    %50 = arith.truncf %49 : vector<16x128xf32> to vector<16x128xbf16>
    %c0_36 = arith.constant 0 : index
    %c0_37 = arith.constant 0 : index
    %51 = vector.load %arg5[%c0_36, %c0_37] : memref<128x128xbf16, #tpu.memory_space<vmem>>, vector<128x128xbf16>
    %cst_38 = arith.constant dense<0.000000e+00> : vector<16x128xf32>
    %52 = tpu.matmul %50, %51, %cst_38 {dimension_numbers = #tpu.dot_dimension_numbers<[1], [0], [0], [1], [0, 0, 1, 1], [], []>} : vector<16x128xbf16>, vector<128x128xbf16>, vector<16x128xf32> -> vector<16x128xf32>
    %c0_39 = arith.constant 0 : index
    %c0_40 = arith.constant 0 : index
    %53 = vector.load %arg6[%c0_39, %c0_40] : memref<1x128xf32, #tpu.memory_space<vmem>>, vector<1x128xf32>
    %54 = vector.broadcast %53 : vector<1x128xf32> to vector<16x128xf32>
    %55 = arith.addf %52, %54 : vector<16x128xf32>
    %c0_41 = arith.constant 0 : index
    %c0_42 = arith.constant 0 : index
    %56 = vector.load %arg7[%c0_41, %c0_42] : memref<16x128xf32, #tpu.memory_space<vmem>>, vector<16x128xf32>
    tpu.vector_store %arg7[%c0_41, %c0_42], %55 {strides = array<i32>} : memref<16x128xf32, #tpu.memory_space<vmem>>, vector<16x128xf32>,
    return
  }
}

</mosaic_0001>

<bundles_post_ra>
// kernel: tpu_custom_call.1
= control target key start
LH: loop header
LB: loop body
LE: loop exit
PB: predicated region body
PF: predicated region fallthrough
CT: control target
= control target key end

     0   :  { %12 = vsyncpa [#allocation3], 0  ;;  %s1226_s0 = inlined_call_operand.hbm [shape: f32[16,128], index: 0, kind: input, shape index: {}]   ;;  %s1227_s1 = inlined_call_operand.hbm [shape: bf16[16,16], index: 1, kind: input, shape index: {}]   ;;  %s1228_s2 = inlined_call_operand.hbm [shape: bf16[3,128,128], index: 2, kind: input, shape index: {}]   ;;  %s1229_s3 = inlined_call_operand.vmem [shape: f32[3,1,128], index: 3, kind: input, shape index: {}]   ;;  %s1230_s4 = inlined_call_operand.vmem [shape: f32[3,1,128], index: 4, kind: input, shape index: {}]   ;;  %s1231_s5 = inlined_call_operand.hbm [shape: bf16[128,128], index: 5, kind: input, shape index: {}]   ;;  %s1232_s6 = inlined_call_operand.vmem [shape: f32[1,128], index: 6, kind: input, shape index: {}]   ;;  %s1233_s7 = inlined_call_operand.hbm [shape: f32[16,128], index: 7, kind: output, shape index: {}]  }
   0x1   :  { %13 = vsyncpa [#allocation6], 0 }
   0x2   :  { %14 = vsyncpa [#allocation9], 0 }
   0x3   :  { %15 = vsyncpa [#allocation4], 0  ;;  %s1067_s24 = smov [#allocation5]  }
   0x4   :  { %s33_s25 = sshll.u32 %s1067_s24, 4  ;;  %s34_s25 = int_to_ptr.vmem [resolvable:$true] %s33_s25 }
   0x5   :  { %s967_s26 = scalar_lea.vmem %s34_s25, 128  ;;  %p972_p1 = scmp.lt.s32.totalorder %s34_s25, %s34_s25 }
   0x6   :  { %p968_p0 = scmp.ne.s32.totalorder %s34_s25, %s967_s26  ;;  %p973_p2 = scmp.lt.s32.totalorder %s967_s26, %s967_s26 }
   0x8   :  { %p974_p3 = por %p973_p2, %p972_p1 }
   0xa   :  { %p975_p4 = pnand %p974_p3, %p968_p0 }
   0xc   :  { %978 = shalt.err (!%p975_p4)
}
   0xd   :  { %s1068_s27 = smov 64   ;;  %s1069_s28 = smov 4  }
   0xe   :  { %39 = dma.hbm_to_vmem [thread:$0]  %s1227_s1, 128, %s34_s25, [#allocation6], %s1068_s27, %s1068_s27, %s1069_s28  }
   0xf   :  { %s1070_s8 = smov [#allocation2]  }
  0x10   :  { %s21_s9 = sshll.u32 %s1070_s8, 4  ;;  %s22_s9 = int_to_ptr.vmem [resolvable:$true] %s21_s9 }
  0x11   :  { %s987_s10 = scalar_lea.vmem %s22_s9, 256  ;;  %p992_p6 = scmp.lt.s32.totalorder %s22_s9, %s22_s9 }
  0x12   :  { %p988_p5 = scmp.ne.s32.totalorder %s22_s9, %s987_s10  ;;  %p993_p7 = scmp.lt.s32.totalorder %s987_s10, %s987_s10 }
  0x14   :  { %p994_p8 = por %p993_p7, %p992_p6 }
  0x16   :  { %p995_p9 = pnand %p994_p8, %p988_p5 }
  0x18   :  { %998 = shalt.err (!%p995_p9)
}
  0x19   :  { %s1071_s11 = smov 128   ;;  %s1072_s12 = smov 8  }
  0x1a   :  { %27 = dma.hbm_to_vmem [thread:$0]  %s1226_s0, 256, %s22_s9, [#allocation3], %s1071_s11, %s1071_s11, %s1072_s12  }
  0x1b   :  { %s1073_s1 = smov [#allocation7]   ;;  %s1074_s16 = smov [#allocation8]  }
  0x1c   :  { %s45_s15 = sshll.u32 %s1073_s1, 4  ;;  %s61_s17 = sshll.u32 %s1074_s16, 4  ;;  %s46_s15 = int_to_ptr.vmem [resolvable:$true] %s45_s15  ;;  %s62_s17 = int_to_ptr.vmem [resolvable:$true] %s61_s17 }
  0x1d   :  { %s1007_s18 = scalar_lea.vmem %s46_s15, 3072  ;;  %p1012_p11 = scmp.lt.s32.totalorder %s46_s15, %s46_s15 }
  0x1e   :  { %p1008_p10 = scmp.ne.s32.totalorder %s46_s15, %s1007_s18  ;;  %p1013_p12 = scmp.lt.s32.totalorder %s1007_s18, %s1007_s18 }
  0x20   :  { %p1014_p13 = por %p1013_p12, %p1012_p11 }
  0x22   :  { %p1015_p0 = pnand %p1014_p13, %p1008_p10 }
  0x24   :  { %1018 = shalt.err (!%p1015_p0)
}
  0x25   :  { %51 = dma.hbm_to_vmem [thread:$0]  %s1228_s2, 3072, %s46_s15, [#allocation6], %s1068_s27, %s1068_s27, %s1069_s28  }
  0x26   :  { %s1027_s0 = scalar_lea.vmem %s62_s17, 1024  ;;  %p1032_p2 = scmp.lt.s32.totalorder %s62_s17, %s62_s17 }
  0x27   :  { %p1028_p1 = scmp.ne.s32.totalorder %s62_s17, %s1027_s0  ;;  %p1033_p3 = scmp.lt.s32.totalorder %s1027_s0, %s1027_s0 }
  0x29   :  { %p1034_p4 = por %p1033_p3, %p1032_p2 }
  0x2b   :  { %p1035_p5 = pnand %p1034_p4, %p1028_p1 }
  0x2d   :  { %1038 = shalt.err (!%p1035_p5)
}
  0x2e   :  { %67 = dma.hbm_to_vmem [thread:$0]  %s1231_s5, 1024, %s62_s17, [#allocation9], %s1068_s27, %s1068_s27, %s1069_s28  }
  0x2f   :  { %1059 = dma.done.wait [#allocation3], 256  }
  0x30   :  { %1060 = vsyncadd [#allocation3], 4294967040 }
  0x31   :  { %1061 = dma.done.wait [#allocation6], 3200  }
  0x32   :  { %1062 = vsyncadd [#allocation6], 4294964096 }
  0x33   :  { %1063 = dma.done.wait [#allocation9], 1024  }
  0x34   :  { %1064 = vsyncadd [#allocation9], 4294966272  ;;  %v1075_v0 = vmov 0.0   ;;  %vm1076_vm0 = vmmov 0   ;;  %v926_v1 = vld [vmem:[#allocation7 + $0x38] sm:$0xff]   ;;  %v927_v2 = vld [vmem:[#allocation7 + $0x30] sm:$0xff]  }
  0x35   :  { %817 = vmatprep.subr.bf16.mxu0 %v1075_v0  ;;  %833 = vmatprep.mubr.msk.bf16.mxu0 %vm1076_vm0, %v1075_v0  ;;  %v928_v3 = vld [vmem:[#allocation7 + $0x28] sm:$0xff]   ;;  %v929_v4 = vld [vmem:[#allocation7 + $0x20] sm:$0xff]   ;;  %v930_v5 = vld [vmem:[#allocation7 + $0x18] sm:$0xff]   ;;  %vm213_vm1 = vcmask 130048   ;;  %s1077_s13 = smov [#allocation10]  }
  0x36   :  { %837 = vmatprep.subr.bf16.mxu1 %v1075_v0  ;;  %839 = vmatprep.mubr.msk.bf16.mxu1 %vm1076_vm0, %v1075_v0  ;;  %v931_v6 = vld [vmem:[#allocation7 + $0x10] sm:$0xff]   ;;  %v932_v7 = vld [vmem:[#allocation7 + $0x8] sm:$0xff]   ;;  %v933_v8 = vld [vmem:[#allocation7] sm:$0xff]   ;;  %s714_s14 = sshll.u32 %s1077_s13, 4  ;;  %s715_s14 = int_to_ptr.vmem [resolvable:$true] %s714_s14 }
  0x37   :  { %818 = vmatpush3.bf16.msra.mxu0 %v926_v1  ;;  %v85_v9 = vld [vmem:[#allocation2] sm:$0xff]  ;;  %v86_v10 = vld [vmem:[#allocation2 + $0x8] sm:$0xff]  ;;  %v1161_v20 = vld [vmem:[#allocation5] sm:$0xff]   ;;  %p1044_p7 = scmp.lt.s32.totalorder %s715_s14, %s715_s14 }
  0x38   :  { %819 = vmatprep.subr.bf16.mxu0 %v1075_v0  ;;  %v87_v11 = vpack.c.bf16 %v86_v10, %v85_v9  ;;  %v728_v13 = vld [vmem:[%s1229_s3] ss:$0 sm:$0xff]  ;;  %v935_v21 = vld [vmem:[#allocation7 + $0x78] sm:$0xff]   ;;  %v936_v22 = vld [vmem:[#allocation7 + $0x70] sm:$0xff]  }
  0x39   :  { %v937_v23 = vld [vmem:[#allocation7 + $0x68] sm:$0xff]   ;;  %v938_v24 = vld [vmem:[#allocation7 + $0x60] sm:$0xff]   ;;  %v939_v25 = vld [vmem:[#allocation7 + $0x58] sm:$0xff]  }
  0x3a   :  { %v940_v26 = vld [vmem:[#allocation7 + $0x50] sm:$0xff]   ;;  %v941_v27 = vld [vmem:[#allocation7 + $0x48] sm:$0xff]   ;;  %v942_v28 = vld [vmem:[#allocation7 + $0x40] sm:$0xff]  }
  0x3b   :  { %820 = vmatpush3.bf16.msra.mxu0 %v927_v2  ;;  %v737_v29 = vld [vmem:[%s1230_s4] ss:$0 sm:$0xff]  ;;  %v741_v40 = vld [vmem:[%s1229_s3 + $0x1] ss:$0 sm:$0xff]  ;;  %v943_v47 = vld [vmem:[#allocation7 + $0xb8] sm:$0xff]  }
  0x3c   :  { %821 = vmatprep.subr.bf16.mxu0 %v1075_v0  ;;  %v944_v48 = vld [vmem:[#allocation7 + $0xb0] sm:$0xff]   ;;  %v945_v49 = vld [vmem:[#allocation7 + $0xa8] sm:$0xff]   ;;  %v946_v50 = vld [vmem:[#allocation7 + $0xa0] sm:$0xff]  }
  0x3d   :  { %v947_v51 = vld [vmem:[#allocation7 + $0x98] sm:$0xff]   ;;  %v948_v52 = vld [vmem:[#allocation7 + $0x90] sm:$0xff]   ;;  %v949_v53 = vld [vmem:[#allocation7 + $0x88] sm:$0xff]  }
  0x3e   :  { %v950_v54 = vld [vmem:[#allocation7 + $0x80] sm:$0xff]   ;;  %v751_v55 = vld [vmem:[%s1230_s4 + $0x1] ss:$0 sm:$0xff]  ;;  %v951_v10 = vld [vmem:[#allocation8 + $0x38] sm:$0xff]  }
  0x3f   :  { %822 = vmatpush3.bf16.msra.mxu0 %v928_v3  ;;  %v754_v3 = vld [vmem:[%s1229_s3 + $0x2] ss:$0 sm:$0xff] }
  0x40   :  { %823 = vmatprep.subr.bf16.mxu0 %v1075_v0 }
  0x43   :  { %824 = vmatpush3.bf16.msra.mxu0 %v929_v4 }
  0x44   :  { %825 = vmatprep.subr.bf16.mxu0 %v1075_v0 }
  0x47   :  { %826 = vmatpush3.bf16.msra.mxu0 %v930_v5 }
  0x48   :  { %827 = vmatprep.subr.bf16.mxu0 %v1075_v0 }
  0x4b   :  { %828 = vmatpush3.bf16.msra.mxu0 %v931_v6 }
  0x4c   :  { %829 = vmatprep.subr.bf16.mxu0 %v1075_v0 }
  0x4f   :  { %830 = vmatpush3.bf16.msra.mxu0 %v932_v7 }
  0x50   :  { %831 = vmatprep.subr.bf16.mxu0 %v1075_v0 }
  0x53   :  { %832 = vmatpush3.bf16.msra.mxu0 %v933_v8 }
  0x54   :  { %889 = vmatprep.subr.bf16.mxu0 %v1075_v0 }
  0x56   :  { %834 = vmatmul.mubr.bf16.vlgmr.msra.gmra.mxu0 %v87_v11  ;;  %v952_v11 = vld [vmem:[#allocation8 + $0x30] sm:$0xff]  }
  0x57   :  { %891 = vmatprep.mubr.msk.bf16.mxu0 %vm1076_vm0, %v1075_v0 }
 0x116   :  { %v193_v12 = vpop.f32.mrf.mxu0 }
 0x117   :  { %v194_v16 = vadd.f32 %v728_v13, %v193_v12  ;;  %v953_v12 = vld [vmem:[#allocation8 + $0x28] sm:$0xff]  }
 0x118   :  { %v835_v14 = vpop.f32.mrf.mxu0 }
 0x119   :  { %v955_v14 = vld [vmem:[#allocation8 + $0x18] sm:$0xff]  }
 0x11a   :  { %v196_v15 = vpop.f32.mrf.mxu0 }
 0x11b   :  { %v197_v17 = vadd.f32 %v728_v13, %v196_v15  ;;  %v954_v13 = vld [vmem:[#allocation8 + $0x20] sm:$0xff]   ;;  %v956_v15 = vld [vmem:[#allocation8 + $0x10] sm:$0xff]  }
 0x11c   :  { %v836_v18 = vpop.f32.mrf.mxu0 }
 0x11d   :  { %v200_v19 = vpack.c.bf16 %v197_v17, %v194_v16  ;;  %v957_v16 = vld [vmem:[#allocation8 + $0x8] sm:$0xff]   ;;  %v958_v17 = vld [vmem:[#allocation8] sm:$0xff]  }
 0x11e   :  { %v764_v18 = vld [vmem:[%s1230_s4 + $0x2] ss:$0 sm:$0xff]  ;;  %s1039_s4 = scalar_lea.vmem %s715_s14, 256 }
 0x11f   :  { %838 = vmatpush3.bf16.msra.mxu1 %v200_v19  ;;  %p1040_p6 = scmp.ne.s32.totalorder %s715_s14, %s1039_s4  ;;  %p1045_p8 = scmp.lt.s32.totalorder %s1039_s4, %s1039_s4 }
 0x120   :  { %843 = vmatprep.subr.bf16.mxu1 %v1075_v0 }
 0x121   :  { %p1046_p9 = por %p1045_p8, %p1044_p7 }
 0x122   :  { %840 = vmatmul.mubr.msk.bf16.vlgmr.msra.gmra.mxu1 %vm213_vm1, %v1161_v20 }
 0x123   :  { %844 = vmatpush3.bf16.msra.mxu1 %v935_v21  ;;  %859 = vmatprep.mubr.msk.bf16.mxu1 %vm1076_vm0, %v1075_v0  ;;  %p1047_p10 = pnand %p1046_p9, %p1040_p6 }
 0x124   :  { %845 = vmatprep.subr.bf16.mxu1 %v1075_v0 }
 0x127   :  { %846 = vmatpush3.bf16.msra.mxu1 %v936_v22 }
 0x128   :  { %847 = vmatprep.subr.bf16.mxu1 %v1075_v0 }
 0x12b   :  { %848 = vmatpush3.bf16.msra.mxu1 %v937_v23 }
 0x12c   :  { %849 = vmatprep.subr.bf16.mxu1 %v1075_v0 }
 0x12f   :  { %850 = vmatpush3.bf16.msra.mxu1 %v938_v24 }
 0x130   :  { %851 = vmatprep.subr.bf16.mxu1 %v1075_v0 }
 0x133   :  { %852 = vmatpush3.bf16.msra.mxu1 %v939_v25 }
 0x134   :  { %853 = vmatprep.subr.bf16.mxu1 %v1075_v0 }
 0x137   :  { %854 = vmatpush3.bf16.msra.mxu1 %v940_v26 }
 0x138   :  { %855 = vmatprep.subr.bf16.mxu1 %v1075_v0 }
 0x13b   :  { %856 = vmatpush3.bf16.msra.mxu1 %v941_v27 }
 0x13c   :  { %857 = vmatprep.subr.bf16.mxu1 %v1075_v0 }
 0x13f   :  { %858 = vmatpush3.bf16.msra.mxu1 %v942_v28 }
 0x140   :  { %863 = vmatprep.subr.bf16.mxu1 %v1075_v0 }
 0x1e2   :  { %v251_v30 = vpop.f32.mrf.mxu1 }
 0x1e3   :  { %v252_v32 = vadd.f32 %v737_v29, %v251_v30 }
 0x1e4   :  { %v841_v31 = vpop.f32.mrf.mxu1 }
 0x1e5   :  { %v258_v36 = vmax.f32 %v252_v32, 0.0 }
 0x1e6   :  { %v254_v33 = vpop.f32.mrf.mxu1 }
 0x1e7   :  { %v255_v34 = vadd.f32 %v737_v29, %v254_v33 }
 0x1e8   :  { %v842_v35 = vpop.f32.mrf.mxu1 }
 0x1e9   :  { %v259_v37 = vmax.f32 %v255_v34, 0.0 }
 0x1eb   :  { %v260_v38 = vpack.c.bf16 %v259_v37, %v258_v36 }
 0x1ed   :  { %860 = vmatmul.mubr.bf16.vlgmr.msra.gmra.mxu1 %v260_v38 }
 0x1ee   :  { %865 = vmatprep.mubr.msk.bf16.mxu1 %vm1076_vm0, %v1075_v0 }
 0x2ad   :  { %v368_v39 = vpop.f32.mrf.mxu1 }
 0x2ae   :  { %v369_v43 = vadd.f32 %v741_v40, %v368_v39 }
 0x2af   :  { %v861_v41 = vpop.f32.mrf.mxu1 }
 0x2b1   :  { %v371_v42 = vpop.f32.mrf.mxu1 }
 0x2b2   :  { %v372_v44 = vadd.f32 %v741_v40, %v371_v42 }
 0x2b3   :  { %v862_v45 = vpop.f32.mrf.mxu1 }
 0x2b4   :  { %v375_v46 = vpack.c.bf16 %v372_v44, %v369_v43 }
 0x2b6   :  { %864 = vmatpush3.bf16.msra.mxu1 %v375_v46 }
 0x2b7   :  { %869 = vmatprep.subr.bf16.mxu1 %v1075_v0 }
 0x2b9   :  { %866 = vmatmul.mubr.msk.bf16.vlgmr.msra.gmra.mxu1 %vm213_vm1, %v1161_v20 }
 0x2ba   :  { %870 = vmatpush3.bf16.msra.mxu1 %v943_v47  ;;  %885 = vmatprep.mubr.msk.bf16.mxu1 %vm1076_vm0, %v1075_v0 }
 0x2bb   :  { %871 = vmatprep.subr.bf16.mxu1 %v1075_v0 }
 0x2be   :  { %872 = vmatpush3.bf16.msra.mxu1 %v944_v48 }
 0x2bf   :  { %873 = vmatprep.subr.bf16.mxu1 %v1075_v0 }
 0x2c2   :  { %874 = vmatpush3.bf16.msra.mxu1 %v945_v49 }
 0x2c3   :  { %875 = vmatprep.subr.bf16.mxu1 %v1075_v0 }
 0x2c6   :  { %876 = vmatpush3.bf16.msra.mxu1 %v946_v50 }
 0x2c7   :  { %877 = vmatprep.subr.bf16.mxu1 %v1075_v0 }
 0x2ca   :  { %878 = vmatpush3.bf16.msra.mxu1 %v947_v51 }
 0x2cb   :  { %879 = vmatprep.subr.bf16.mxu1 %v1075_v0 }
 0x2ce   :  { %880 = vmatpush3.bf16.msra.mxu1 %v948_v52 }
 0x2cf   :  { %881 = vmatprep.subr.bf16.mxu1 %v1075_v0 }
 0x2d2   :  { %882 = vmatpush3.bf16.msra.mxu1 %v949_v53 }
 0x2d3   :  { %883 = vmatprep.subr.bf16.mxu1 %v1075_v0 }
 0x2d6   :  { %884 = vmatpush3.bf16.msra.mxu1 %v950_v54 }
 0x379   :  { %v418_v56 = vpop.f32.mrf.mxu1 }
 0x37a   :  { %v419_v58 = vadd.f32 %v751_v55, %v418_v56 }
 0x37b   :  { %v867_v57 = vpop.f32.mrf.mxu1 }
 0x37c   :  { %v425_v62 = vmax.f32 %v419_v58, 0.0 }
 0x37d   :  { %v421_v59 = vpop.f32.mrf.mxu1 }
 0x37e   :  { %v422_v60 = vadd.f32 %v751_v55, %v421_v59 }
 0x37f   :  { %v868_v61 = vpop.f32.mrf.mxu1 }
 0x380   :  { %v426_v63 = vmax.f32 %v422_v60, 0.0 }
 0x382   :  { %v427_v1 = vpack.c.bf16 %v426_v63, %v425_v62 }
 0x384   :  { %886 = vmatmul.mubr.bf16.vlgmr.msra.gmra.mxu1 %v427_v1 }
 0x444   :  { %v535_v2 = vpop.f32.mrf.mxu1 }
 0x445   :  { %v536_v6 = vadd.f32 %v754_v3, %v535_v2 }
 0x446   :  { %v887_v4 = vpop.f32.mrf.mxu1 }
 0x448   :  { %v538_v5 = vpop.f32.mrf.mxu1 }
 0x449   :  { %v539_v7 = vadd.f32 %v754_v3, %v538_v5 }
 0x44a   :  { %v888_v8 = vpop.f32.mrf.mxu1 }
 0x44b   :  { %v542_v9 = vpack.c.bf16 %v539_v7, %v536_v6 }
 0x44d   :  { %890 = vmatpush3.bf16.msra.mxu0 %v542_v9 }
 0x44e   :  { %895 = vmatprep.subr.bf16.mxu0 %v1075_v0 }
 0x450   :  { %892 = vmatmul.mubr.msk.bf16.vlgmr.msra.gmra.mxu0 %vm213_vm1, %v1161_v20 }
 0x451   :  { %896 = vmatpush3.bf16.msra.mxu0 %v951_v10  ;;  %911 = vmatprep.mubr.msk.bf16.mxu0 %vm1076_vm0, %v1075_v0 }
 0x452   :  { %897 = vmatprep.subr.bf16.mxu0 %v1075_v0 }
 0x455   :  { %898 = vmatpush3.bf16.msra.mxu0 %v952_v11 }
 0x456   :  { %899 = vmatprep.subr.bf16.mxu0 %v1075_v0 }
 0x459   :  { %900 = vmatpush3.bf16.msra.mxu0 %v953_v12 }
 0x45a   :  { %901 = vmatprep.subr.bf16.mxu0 %v1075_v0 }
 0x45d   :  { %902 = vmatpush3.bf16.msra.mxu0 %v954_v13 }
 0x45e   :  { %903 = vmatprep.subr.bf16.mxu0 %v1075_v0 }
 0x461   :  { %904 = vmatpush3.bf16.msra.mxu0 %v955_v14 }
 0x462   :  { %905 = vmatprep.subr.bf16.mxu0 %v1075_v0 }
 0x465   :  { %906 = vmatpush3.bf16.msra.mxu0 %v956_v15 }
 0x466   :  { %907 = vmatprep.subr.bf16.mxu0 %v1075_v0 }
 0x469   :  { %908 = vmatpush3.bf16.msra.mxu0 %v957_v16 }
 0x46a   :  { %909 = vmatprep.subr.bf16.mxu0 %v1075_v0  ;;  %v766_v0 = vld [vmem:[%s1232_s6] ss:$0 sm:$0xff] }
 0x46d   :  { %910 = vmatpush3.bf16.msra.mxu0 %v958_v17 }
 0x510   :  { %v585_v19 = vpop.f32.mrf.mxu0 }
 0x511   :  { %v586_v21 = vadd.f32 %v764_v18, %v585_v19 }
 0x512   :  { %v893_v20 = vpop.f32.mrf.mxu0 }
 0x513   :  { %v592_v25 = vmax.f32 %v586_v21, 0.0 }
 0x514   :  { %v588_v22 = vpop.f32.mrf.mxu0 }
 0x515   :  { %v589_v23 = vadd.f32 %v764_v18, %v588_v22 }
 0x516   :  { %v894_v24 = vpop.f32.mrf.mxu0 }
 0x517   :  { %v593_v26 = vmax.f32 %v589_v23, 0.0 }
 0x519   :  { %v594_v27 = vpack.c.bf16 %v593_v26, %v592_v25 }
 0x51b   :  { %912 = vmatmul.mubr.bf16.vlgmr.msra.gmra.mxu0 %v594_v27 }
 0x5db   :  { %v700_v28 = vpop.f32.mrf.mxu0 }
 0x5dc   :  { %v701_v29 = vadd.f32 %v766_v0, %v700_v28 }
 0x5dd   :  { %v913_v30 = vpop.f32.mrf.mxu0 }
 0x5de   :  { %707 = vst [vmem:[#allocation10] sm:$0xff] %v701_v29 }
 0x5df   :  { %v703_v31 = vpop.f32.mrf.mxu0 }
 0x5e0   :  { %v704_v32 = vadd.f32 %v766_v0, %v703_v31 }
 0x5e1   :  { %v914_v33 = vpop.f32.mrf.mxu0 }
 0x5e2   :  { %708 = vst [vmem:[#allocation10 + $0x8] sm:$0xff] %v704_v32 }
 0x5e3   :  { %1050 = shalt.err (!%p1047_p10)
}
 0x5e4   :  { %720 = dma.vmem_to_hbm [thread:$0]  %s715_s14, 256, %s1233_s7, [#allocation4], %s1071_s11, %s1071_s11, %s1072_s12  }
 0x5e5   :  { %1065 = dma.done.wait [#allocation4], 256  }
 0x5e6   :  { %1066 = vsyncadd [#allocation4], 4294967040 }
 0x5e7   :  { %724 = vsyncpa [#allocation3], 1 }
 0x5e8   :  { %725 = vsyncpa [#allocation6], 1 }
 0x5e9   :  { %726 = vsyncpa [#allocation9], 1 }
 0x5ea   :  { %727 = vsyncpa [#allocation4], 1 }

</bundles_post_ra>
